<compile_context>
chip_gen: v6e
topology: v6e:2x2x1
jax: 0.10.0
libtpu: 0.0.40
codegen_flags: <defaults>
</compile_context>

<pallas_src>
import jax
import jax.numpy as jnp
from typing import NamedTuple
from jax.experimental import pallas as pl
from jax.experimental.pallas import tpu as pltpu


def _round_up(x, m):
    return (x + m - 1) // m * m


def _cdiv(a, b):
    return (a + b - 1) // b


def _choose_tile_m(B, cap=256):
    """Batch tile: multiple of 16 (bf16 packing); >=2 grid steps when possible
    so v7x's two TensorCores both get work via the 'parallel' grid axis."""
    B16 = _round_up(B, 16)
    if B16 <= 16:
        return B16
    n_tiles = max(2, _cdiv(B16, cap))
    return _round_up(_cdiv(B16, n_tiles), 16)


def _resident_spec(block_shape, single_buffer):
    """BlockSpec for a grid-invariant (weight/bias) operand."""
    ndim = len(block_shape)
    index_map = lambda i: (0,) * ndim
    if single_buffer:
        # Single-buffered: no second (dead) VMEM copy of the resident weights.
        return pl.BlockSpec(block_shape, index_map, pipeline_mode=pl.Buffered(1))
    return pl.BlockSpec(block_shape, index_map)


def mlp_kernel(x_ref, w1_ref, b1_ref, w2_ref, b2_ref, o_ref):
    """Fused fc1 -> ReLU -> fc2 on one batch tile.

    x_ref:  [TILE_M, K]      bf16  (streamed per grid step, double-buffered)
    w1_ref: [K, H_pad]       bf16  (resident across the batch grid)
    b1_ref: [1, H_pad]       f32   (resident)
    w2_ref: [H_pad, N_pad]   bf16  (resident)
    b2_ref: [1, N_pad]       f32   (resident)
    o_ref:  [TILE_M, N_pad]  out_dtype (lane-dense output slab)
    """
    # Hoisted bias reads — one load each per grid step.
    b1 = b1_ref[...]
    b2 = b2_ref[...]

    # fc1: bf16 inputs -> f32 accumulation on the MXU.
    h = jnp.dot(x_ref[...], w1_ref[...], preferred_element_type=jnp.float32)
    # Bias + ReLU in f32 on the VPU (v5e-safe elementwise path).
    h = jnp.maximum(h + b1, 0.0)

    # fc2: cast activation to bf16 only at the dot input; accumulate in f32.
    out = jnp.dot(h.astype(w2_ref.dtype), w2_ref[...],
                  preferred_element_type=jnp.float32)
    o_ref[...] = (out + b2).astype(o_ref.dtype)


class DeepModelParams(NamedTuple):
    w1: jax.Array        # [K, H_pad]     bf16
    b1: jax.Array        # [1, H_pad]     f32
    w2: jax.Array        # [H_pad, N_pad] bf16
    b2: jax.Array        # [H_pad? no -> (1, N_pad)] f32
    dims: tuple          # true (K, H, N)


def prepare_params(w1, b1, w2, b2):
    """One-time padding + bf16 cast of the parameters (init / load time).

    w1: [input, hidden] (pre-transposed vs. PyTorch nn.Linear.weight)
    b1: [hidden],  w2: [hidden, output],  b2: [output]
    """
    K, H = w1.shape
    N = w2.shape[1]
    H_pad = _round_up(H, 128)
    N_pad = _round_up(N, 128)
    bf16, f32 = jnp.bfloat16, jnp.float32
    w1_p = jnp.zeros((K, H_pad), bf16).at[:, :H].set(w1.astype(bf16))
    b1_p = jnp.zeros((1, H_pad), f32).at[:, :H].set(b1.reshape(1, H).astype(f32))
    w2_p = jnp.zeros((H_pad, N_pad), bf16).at[:H, :N].set(w2.astype(bf16))
    b2_p = jnp.zeros((1, N_pad), f32).at[:, :N].set(b2.reshape(1, N).astype(f32))
    return DeepModelParams(w1_p, b1_p, w2_p, b2_p, (K, H, N))


def deep_model_forward(x, params, *, tile_m_cap=256, out_dtype=None,
                       single_buffer_weights=True):
    """DeepModel forward: x:[B, input] -> [B, output]."""
    B, K = x.shape
    Kp, H, N = params.dims
    assert K == Kp, (K, Kp)
    H_pad = params.w1.shape[1]
    N_pad = params.w2.shape[1]
    out_dtype = jnp.dtype(out_dtype) if out_dtype is not None else x.dtype

    tile_m = _choose_tile_m(B, tile_m_cap)
    B_pad = _round_up(B, tile_m)

    # Per-call work on x only: cast to bf16 and pad the batch axis
    # (K is kept unpadded; the block uses the full array dim).
    x_p = jnp.zeros((B_pad, K), jnp.bfloat16).at[:B, :].set(x.astype(jnp.bfloat16))

    # VMEM budget from the real footprint: streamed x/out tiles (2 buffers),
    # resident weights/biases (1 or 2 buffers), fused f32 activation + bf16 copy.
    out_bytes = jnp.dtype(out_dtype).itemsize
    resident = K * H_pad * 2 + H_pad * N_pad * 2 + (H_pad + N_pad) * 4
    resident *= 1 if single_buffer_weights else 2
    streamed = 2 * tile_m * K * 2 + 2 * tile_m * N_pad * out_bytes
    scratch = tile_m * H_pad * (4 + 2)
    vmem_limit = min(max(int((resident + streamed + scratch) * 1.5) + (4 << 20),
                         32 << 20), 64 << 20)

    # Cost hint from the TRUE (unpadded) dims.
    cost = pl.CostEstimate(
        flops=2 * B * (K * H + H * N),
        transcendentals=0,
        bytes_accessed=(B * K * 2 + K * H * 2 + H * N * 2
                        + (H + N) * 4 + B * N * out_bytes),
    )

    grid = (B_pad // tile_m,)
    out_padded = pl.pallas_call(
        mlp_kernel,
        out_shape=jax.ShapeDtypeStruct((B_pad, N_pad), out_dtype),
        grid_spec=pltpu.PrefetchScalarGridSpec(
            num_scalar_prefetch=0,
            grid=grid,
            in_specs=[
                pl.BlockSpec((tile_m, K), lambda i: (i, 0)),             # x (streamed)
                _resident_spec((K, H_pad), single_buffer_weights),       # W1
                _resident_spec((1, H_pad), single_buffer_weights),       # b1
                _resident_spec((H_pad, N_pad), single_buffer_weights),   # W2
                _resident_spec((1, N_pad), single_buffer_weights),       # b2
            ],
            out_specs=pl.BlockSpec((tile_m, N_pad), lambda i: (i, 0)),
        ),
        compiler_params=pltpu.CompilerParams(
            dimension_semantics=("parallel",),
            vmem_limit_bytes=vmem_limit,
        ),
        cost_estimate=cost,
    )(x_p, params.w1, params.b1, params.w2, params.b2)

    # Slice the lane-dense slab back to the logical output shape.
    return out_padded[:B, :N]


def init_params(key, input_size, hidden_size, output_size, dtype=jnp.float32):
    """Deterministic synthetic init mimicking nn.Linear's uniform(-1/sqrt(fan_in), ...)."""
    k1, k2, k3, k4 = jax.random.split(key, 4)
    bound1 = 1.0 / jnp.sqrt(input_size)
    bound2 = 1.0 / jnp.sqrt(hidden_size)
    w1 = jax.random.uniform(k1, (input_size, hidden_size), dtype, -bound1, bound1)
    b1 = jax.random.uniform(k2, (hidden_size,), dtype, -bound1, bound1)
    w2 = jax.random.uniform(k3, (hidden_size, output_size), dtype, -bound2, bound2)
    b2 = jax.random.uniform(k4, (output_size,), dtype, -bound2, bound2)
    return w1, b1, w2, b2


if __name__ == "__main__":
    # Small shapes consistent with the module's forward (pure MLP on 2-D input).
    batch, input_size, hidden_size, output_size = 8, 32, 64, 16

    key = jax.random.PRNGKey(0)
    kx, kp = jax.random.split(key)
    x = jax.random.normal(kx, (batch, input_size), dtype=jnp.float32)
    w1, b1, w2, b2 = init_params(kp, input_size, hidden_size, output_size)

    # One-time parameter preparation (padding + bf16 cast), hoisted out of forward.
    params = prepare_params(w1, b1, w2, b2)

    fwd = jax.jit(lambda xx: deep_model_forward(xx, params))
    try:
        out = jax.block_until_ready(fwd(x))
    except Exception:
        # Fallback for JAX versions without BlockSpec(pipeline_mode=pl.Buffered(...)).
        fwd = jax.jit(lambda xx: deep_model_forward(xx, params,
                                                    single_buffer_weights=False))
        out = jax.block_until_ready(fwd(x))

    # Reference in plain f32 JAX (same math as the PyTorch module). Tolerance is
    # loosened vs. pure-f32 because the kernel uses bf16 dot inputs (f32 accum).
    ref = jnp.maximum(x @ w1 + b1[None, :], 0.0) @ w2 + b2[None, :]
    assert out.shape == (batch, output_size)
    assert jnp.allclose(out, ref, atol=2e-2, rtol=2e-2), (
        float(jnp.max(jnp.abs(out - ref))))

    print("KERNEL_OK")
</pallas_src>

<mosaic_0001>
module attributes {stable_mosaic.version = 11 : i64} {
  func.func @mlp_kernel(%arg0: i32, %arg1: memref<16x32xbf16, #tpu.memory_space<vmem>>, %arg2: memref<32x128xbf16, #tpu.memory_space<vmem>>, %arg3: memref<1x128xf32, #tpu.memory_space<vmem>>, %arg4: memref<128x128xbf16, #tpu.memory_space<vmem>>, %arg5: memref<1x128xf32, #tpu.memory_space<vmem>>, %arg6: memref<16x128xf32, #tpu.memory_space<vmem>>) attributes {dimension_semantics = [#tpu.dimension_semantics<parallel>], iteration_bounds = array<i64: 1>, scalar_prefetch = 0 : i64, scratch_operands = 0 : i64, tpu.core_type = #tpu.core_type<tc>, window_params = [{transform_indices = @transform_0, window_bounds = array<i64: 16, 32>}, {pipeline_mode = #tpu.pipeline_mode<synchronous>, transform_indices = @transform_1, window_bounds = array<i64: 32, 128>}, {pipeline_mode = #tpu.pipeline_mode<synchronous>, transform_indices = @transform_2, window_bounds = array<i64: 1, 128>}, {pipeline_mode = #tpu.pipeline_mode<synchronous>, transform_indices = @transform_3, window_bounds = array<i64: 128, 128>}, {pipeline_mode = #tpu.pipeline_mode<synchronous>, transform_indices = @transform_4, window_bounds = array<i64: 1, 128>}, {transform_indices = @transform_5, window_bounds = array<i64: 16, 128>}]} {
    %c0 = arith.constant 0 : index
    %c0_0 = arith.constant 0 : index
    %0 = vector.load %arg3[%c0, %c0_0] : memref<1x128xf32, #tpu.memory_space<vmem>>, vector<1x128xf32>
    %c0_1 = arith.constant 0 : index
    %c0_2 = arith.constant 0 : index
    %1 = vector.load %arg5[%c0_1, %c0_2] : memref<1x128xf32, #tpu.memory_space<vmem>>, vector<1x128xf32>
    %c0_3 = arith.constant 0 : index
    %c0_4 = arith.constant 0 : index
    %2 = vector.load %arg1[%c0_3, %c0_4] : memref<16x32xbf16, #tpu.memory_space<vmem>>, vector<16x32xbf16>
    %c0_5 = arith.constant 0 : index
    %c0_6 = arith.constant 0 : index
    %3 = vector.load %arg2[%c0_5, %c0_6] : memref<32x128xbf16, #tpu.memory_space<vmem>>, vector<32x128xbf16>
    %cst = arith.constant dense<0.000000e+00> : vector<16x128xf32>
    %4 = tpu.matmul %2, %3, %cst {dimension_numbers = #tpu.dot_dimension_numbers<[1], [0], [0], [1], [0, 0, 1, 1], [], []>} : vector<16x32xbf16>, vector<32x128xbf16>, vector<16x128xf32> -> vector<16x128xf32>
    %5 = vector.broadcast %0 : vector<1x128xf32> to vector<16x128xf32>
    %6 = arith.addf %4, %5 : vector<16x128xf32>
    %cst_7 = arith.constant 0.000000e+00 : f32
    %7 = vector.broadcast %cst_7 : f32 to vector<16x128xf32>
    %8 = arith.maximumf %6, %7 : vector<16x128xf32>
    %9 = arith.truncf %8 : vector<16x128xf32> to vector<16x128xbf16>
    %c0_8 = arith.constant 0 : index
    %c0_9 = arith.constant 0 : index
    %10 = vector.load %arg4[%c0_8, %c0_9] : memref<128x128xbf16, #tpu.memory_space<vmem>>, vector<128x128xbf16>
    %cst_10 = arith.constant dense<0.000000e+00> : vector<16x128xf32>
    %11 = tpu.matmul %9, %10, %cst_10 {dimension_numbers = #tpu.dot_dimension_numbers<[1], [0], [0], [1], [0, 0, 1, 1], [], []>} : vector<16x128xbf16>, vector<128x128xbf16>, vector<16x128xf32> -> vector<16x128xf32>
    %12 = vector.broadcast %1 : vector<1x128xf32> to vector<16x128xf32>
    %13 = arith.addf %11, %12 : vector<16x128xf32>
    %c0_11 = arith.constant 0 : index
    %c0_12 = arith.constant 0 : index
    %14 = vector.load %arg6[%c0_11, %c0_12] : memref<16x128xf32, #tpu.memory_space<vmem>>, vector<16x128xf32>
    tpu.vector_store %arg6[%c0_11, %c0_12], %13 {strides = array<i32>} : memref<16x128xf32, #tpu.memory_space<vmem>>, vector<16x128xf32>,
    return
  }
  func.func @transform_0(%arg0: i32) -> (i32, i32) {
    %c0_i32 = arith.constant 0 : i32
    %c0_i32_0 = arith.constant 0 : i32
    return %arg0, %c0_i32 : i32, i32
  }
  func.func @transform_1(%arg0: i32) -> (i32, i32) {
    %c0_i32 = arith.constant 0 : i32
    %c0_i32_0 = arith.constant 0 : i32
    %c0_i32_1 = arith.constant 0 : i32
    return %c0_i32, %c0_i32_0 : i32, i32
  }
  func.func @transform_2(%arg0: i32) -> (i32, i32) {
    %c0_i32 = arith.constant 0 : i32
    %c0_i32_0 = arith.constant 0 : i32
    %c0_i32_1 = arith.constant 0 : i32
    return %c0_i32, %c0_i32_0 : i32, i32
  }
  func.func @transform_3(%arg0: i32) -> (i32, i32) {
    %c0_i32 = arith.constant 0 : i32
    %c0_i32_0 = arith.constant 0 : i32
    %c0_i32_1 = arith.constant 0 : i32
    return %c0_i32, %c0_i32_0 : i32, i32
  }
  func.func @transform_4(%arg0: i32) -> (i32, i32) {
    %c0_i32 = arith.constant 0 : i32
    %c0_i32_0 = arith.constant 0 : i32
    %c0_i32_1 = arith.constant 0 : i32
    return %c0_i32, %c0_i32_0 : i32, i32
  }
  func.func @transform_5(%arg0: i32) -> (i32, i32) {
    %c0_i32 = arith.constant 0 : i32
    %c0_i32_0 = arith.constant 0 : i32
    return %arg0, %c0_i32 : i32, i32
  }
}

module attributes {stable_mosaic.version = 11 : i64} {
  func.func @mlp_kernel(%arg0: i32, %arg1: memref<16x32xbf16, #tpu.memory_space<vmem>>, %arg2: memref<32x128xbf16, #tpu.memory_space<vmem>>, %arg3: memref<1x128xf32, #tpu.memory_space<vmem>>, %arg4: memref<128x128xbf16, #tpu.memory_space<vmem>>, %arg5: memref<1x128xf32, #tpu.memory_space<vmem>>, %arg6: memref<16x128xf32, #tpu.memory_space<vmem>>) attributes {dimension_semantics = [#tpu.dimension_semantics<parallel>], iteration_bounds = array<i64: 1>, scalar_prefetch = 0 : i64, scratch_operands = 0 : i64, tpu.core_type = #tpu.core_type<tc>, window_params = [{transform_indices = @transform_0, window_bounds = array<i64: 16, 32>}, {pipeline_mode = #tpu.pipeline_mode<synchronous>, transform_indices = @transform_1, window_bounds = array<i64: 32, 128>}, {pipeline_mode = #tpu.pipeline_mode<synchronous>, transform_indices = @transform_2, window_bounds = array<i64: 1, 128>}, {pipeline_mode = #tpu.pipeline_mode<synchronous>, transform_indices = @transform_3, window_bounds = array<i64: 128, 128>}, {pipeline_mode = #tpu.pipeline_mode<synchronous>, transform_indices = @transform_4, window_bounds = array<i64: 1, 128>}, {transform_indices = @transform_5, window_bounds = array<i64: 16, 128>}]} {
    %c0 = arith.constant 0 : index
    %c0_0 = arith.constant 0 : index
    %0 = vector.load %arg3[%c0, %c0_0] : memref<1x128xf32, #tpu.memory_space<vmem>>, vector<1x128xf32>
    %c0_1 = arith.constant 0 : index
    %c0_2 = arith.constant 0 : index
    %1 = vector.load %arg5[%c0_1, %c0_2] : memref<1x128xf32, #tpu.memory_space<vmem>>, vector<1x128xf32>
    %c0_3 = arith.constant 0 : index
    %c0_4 = arith.constant 0 : index
    %2 = vector.load %arg1[%c0_3, %c0_4] : memref<16x32xbf16, #tpu.memory_space<vmem>>, vector<16x32xbf16>
    %c0_5 = arith.constant 0 : index
    %c0_6 = arith.constant 0 : index
    %3 = vector.load %arg2[%c0_5, %c0_6] : memref<32x128xbf16, #tpu.memory_space<vmem>>, vector<32x128xbf16>
    %cst = arith.constant dense<0.000000e+00> : vector<16x128xf32>
    %4 = tpu.matmul %2, %3, %cst {dimension_numbers = #tpu.dot_dimension_numbers<[1], [0], [0], [1], [0, 0, 1, 1], [], []>} : vector<16x32xbf16>, vector<32x128xbf16>, vector<16x128xf32> -> vector<16x128xf32>
    %5 = vector.broadcast %0 : vector<1x128xf32> to vector<16x128xf32>
    %6 = arith.addf %4, %5 : vector<16x128xf32>
    %cst_7 = arith.constant 0.000000e+00 : f32
    %7 = vector.broadcast %cst_7 : f32 to vector<16x128xf32>
    %8 = arith.maximumf %6, %7 : vector<16x128xf32>
    %9 = arith.truncf %8 : vector<16x128xf32> to vector<16x128xbf16>
    %c0_8 = arith.constant 0 : index
    %c0_9 = arith.constant 0 : index
    %10 = vector.load %arg4[%c0_8, %c0_9] : memref<128x128xbf16, #tpu.memory_space<vmem>>, vector<128x128xbf16>
    %cst_10 = arith.constant dense<0.000000e+00> : vector<16x128xf32>
    %11 = tpu.matmul %9, %10, %cst_10 {dimension_numbers = #tpu.dot_dimension_numbers<[1], [0], [0], [1], [0, 0, 1, 1], [], []>} : vector<16x128xbf16>, vector<128x128xbf16>, vector<16x128xf32> -> vector<16x128xf32>
    %12 = vector.broadcast %1 : vector<1x128xf32> to vector<16x128xf32>
    %13 = arith.addf %11, %12 : vector<16x128xf32>
    %c0_11 = arith.constant 0 : index
    %c0_12 = arith.constant 0 : index
    %14 = vector.load %arg6[%c0_11, %c0_12] : memref<16x128xf32, #tpu.memory_space<vmem>>, vector<16x128xf32>
    tpu.vector_store %arg6[%c0_11, %c0_12], %13 {strides = array<i32>} : memref<16x128xf32, #tpu.memory_space<vmem>>, vector<16x128xf32>,
    return
  }
  func.func @transform_0(%arg0: i32) -> (i32, i32) {
    %c0_i32 = arith.constant 0 : i32
    %c0_i32_0 = arith.constant 0 : i32
    return %arg0, %c0_i32 : i32, i32
  }
  func.func @transform_1(%arg0: i32) -> (i32, i32) {
    %c0_i32 = arith.constant 0 : i32
    %c0_i32_0 = arith.constant 0 : i32
    %c0_i32_1 = arith.constant 0 : i32
    return %c0_i32, %c0_i32_0 : i32, i32
  }
  func.func @transform_2(%arg0: i32) -> (i32, i32) {
    %c0_i32 = arith.constant 0 : i32
    %c0_i32_0 = arith.constant 0 : i32
    %c0_i32_1 = arith.constant 0 : i32
    return %c0_i32, %c0_i32_0 : i32, i32
  }
  func.func @transform_3(%arg0: i32) -> (i32, i32) {
    %c0_i32 = arith.constant 0 : i32
    %c0_i32_0 = arith.constant 0 : i32
    %c0_i32_1 = arith.constant 0 : i32
    return %c0_i32, %c0_i32_0 : i32, i32
  }
  func.func @transform_4(%arg0: i32) -> (i32, i32) {
    %c0_i32 = arith.constant 0 : i32
    %c0_i32_0 = arith.constant 0 : i32
    %c0_i32_1 = arith.constant 0 : i32
    return %c0_i32, %c0_i32_0 : i32, i32
  }
  func.func @transform_5(%arg0: i32) -> (i32, i32) {
    %c0_i32 = arith.constant 0 : i32
    %c0_i32_0 = arith.constant 0 : i32
    return %arg0, %c0_i32 : i32, i32
  }
}

</mosaic_0001>

<bundles_post_ra>
// kernel: _lambda_.1
= control target key start
LH: loop header
LB: loop body
LE: loop exit
PB: predicated region body
PF: predicated region fallthrough
CT: control target
= control target key end

     0   :  { %10 = vsyncpa [#allocation3], 0  ;;  %s324_s18 = smov [#allocation2]   ;;  %s383_s0 = inlined_call_operand.vmem [shape: bf16[16,32], index: 0, kind: input, shape index: {}]   ;;  %s384_s1 = inlined_call_operand.vmem [shape: bf16[32,128], index: 1, kind: input, shape index: {}]   ;;  %s385_s2 = inlined_call_operand.vmem [shape: f32[1,128], index: 2, kind: input, shape index: {}]   ;;  %s386_s3 = inlined_call_operand.hbm [shape: bf16[128,128], index: 3, kind: input, shape index: {}]   ;;  %s387_s4 = inlined_call_operand.vmem [shape: f32[1,128], index: 4, kind: input, shape index: {}]   ;;  %s388_s5 = inlined_call_operand.vmem [shape: f32[16,128], index: 5, kind: output, shape index: {}]  }
   0x1   :  { %s22_s19 = sshll.u32 %s324_s18, 4  ;;  %s23_s19 = int_to_ptr.vmem [resolvable:$true] %s22_s19 }
   0x2   :  { %s310_s20 = scalar_lea.vmem %s23_s19, 1024  ;;  %p315_p1 = scmp.lt.s32.totalorder %s23_s19, %s23_s19 }
   0x3   :  { %p311_p0 = scmp.ne.s32.totalorder %s23_s19, %s310_s20  ;;  %p316_p2 = scmp.lt.s32.totalorder %s310_s20, %s310_s20 }
   0x5   :  { %p317_p3 = por %p316_p2, %p315_p1 }
   0x7   :  { %p318_p4 = pnand %p317_p3, %p311_p0 }
   0x9   :  { %321 = shalt.err (!%p318_p4)
}
   0xa   :  { %s325_s21 = smov 64   ;;  %s326_s22 = smov 4  }
   0xb   :  { %28 = dma.hbm_to_vmem [thread:$0]  %s386_s3, 1024, %s23_s19, [#allocation3], %s325_s21, %s325_s21, %s326_s22  }
   0xc   :  { %322 = dma.done.wait [#allocation3], 1024  }
   0xd   :  { %323 = vsyncadd [#allocation3], 4294966272  ;;  %v327_v0 = vmov 0.0   ;;  %vm328_vm0 = vmmov 0   ;;  %v291_v1 = vld [vmem:[%s384_s1 + $0x8] sm:$0xff]   ;;  %v292_v2 = vld [vmem:[%s384_s1] sm:$0xff]  }
   0xe   :  { %258 = vmatprep.subr.bf16.mxu0 %v327_v0  ;;  %262 = vmatprep.mubr.msk.bf16.mxu0 %vm328_vm0, %v327_v0  ;;  %v294_v3 = vld [vmem:[#allocation2 + $0x38] sm:$0xff]   ;;  %v293_v4 = vld [vmem:[%s383_s0] sm:$0xff]   ;;  %v295_v5 = vld [vmem:[#allocation2 + $0x30] sm:$0xff]   ;;  %vm66_vm1 = vcmask 261120  }
   0xf   :  { %266 = vmatprep.subr.bf16.mxu1 %v327_v0  ;;  %282 = vmatprep.mubr.msk.bf16.mxu1 %vm328_vm0, %v327_v0  ;;  %v296_v6 = vld [vmem:[#allocation2 + $0x28] sm:$0xff]   ;;  %v297_v7 = vld [vmem:[#allocation2 + $0x20] sm:$0xff]   ;;  %v298_v8 = vld [vmem:[#allocation2 + $0x18] sm:$0xff]  }
  0x10   :  { %259 = vmatpush3.bf16.msra.mxu0 %v291_v1  ;;  %267 = vmatpush3.bf16.msra.mxu1 %v294_v3  ;;  %v299_v9 = vld [vmem:[#allocation2 + $0x10] sm:$0xff]   ;;  %v300_v10 = vld [vmem:[#allocation2 + $0x8] sm:$0xff]   ;;  %v301_v11 = vld [vmem:[#allocation2] sm:$0xff]  }
  0x11   :  { %260 = vmatprep.subr.bf16.mxu0 %v327_v0  ;;  %268 = vmatprep.subr.bf16.mxu1 %v327_v0  ;;  %v232_v12 = vld [vmem:[%s385_s2] ss:$0 sm:$0xff] }
  0x12   :  { %v237_v22 = vld [vmem:[%s387_s4] ss:$0 sm:$0xff] }
  0x14   :  { %261 = vmatpush3.bf16.msra.mxu0 %v292_v2  ;;  %269 = vmatpush3.bf16.msra.mxu1 %v295_v5 }
  0x15   :  { %270 = vmatprep.subr.bf16.mxu1 %v327_v0 }
  0x17   :  { %263 = vmatmul.mubr.msk.bf16.vlgmr.msra.gmra.mxu0 %vm66_vm1, %v293_v4 }
  0x18   :  { %271 = vmatpush3.bf16.msra.mxu1 %v296_v6 }
  0x19   :  { %272 = vmatprep.subr.bf16.mxu1 %v327_v0 }
  0x1c   :  { %273 = vmatpush3.bf16.msra.mxu1 %v297_v7 }
  0x1d   :  { %274 = vmatprep.subr.bf16.mxu1 %v327_v0 }
  0x20   :  { %275 = vmatpush3.bf16.msra.mxu1 %v298_v8 }
  0x21   :  { %276 = vmatprep.subr.bf16.mxu1 %v327_v0 }
  0x24   :  { %277 = vmatpush3.bf16.msra.mxu1 %v299_v9 }
  0x25   :  { %278 = vmatprep.subr.bf16.mxu1 %v327_v0 }
  0x28   :  { %279 = vmatpush3.bf16.msra.mxu1 %v300_v10 }
  0x29   :  { %280 = vmatprep.subr.bf16.mxu1 %v327_v0 }
  0x2c   :  { %281 = vmatpush3.bf16.msra.mxu1 %v301_v11 }
  0xd7   :  { %v104_v13 = vpop.f32.mrf.mxu0 }
  0xd8   :  { %v105_v15 = vadd.f32 %v232_v12, %v104_v13 }
  0xd9   :  { %v264_v14 = vpop.f32.mrf.mxu0 }
  0xda   :  { %v111_v19 = vmax.f32 %v105_v15, 0.0 }
  0xdb   :  { %v107_v16 = vpop.f32.mrf.mxu0 }
  0xdc   :  { %v108_v17 = vadd.f32 %v232_v12, %v107_v16 }
  0xdd   :  { %v265_v18 = vpop.f32.mrf.mxu0 }
  0xde   :  { %v112_v20 = vmax.f32 %v108_v17, 0.0 }
  0xe0   :  { %v113_v21 = vpack.c.bf16 %v112_v20, %v111_v19 }
  0xe2   :  { %283 = vmatmul.mubr.bf16.vlgmr.msra.gmra.mxu1 %v113_v21 }
 0x1a2   :  { %v218_v23 = vpop.f32.mrf.mxu1 }
 0x1a3   :  { %v219_v24 = vadd.f32 %v237_v22, %v218_v23 }
 0x1a4   :  { %v284_v25 = vpop.f32.mrf.mxu1 }
 0x1a5   :  { %225 = vst [vmem:[%s388_s5] sm:$0xff] %v219_v24 }
 0x1a6   :  { %v221_v26 = vpop.f32.mrf.mxu1 }
 0x1a7   :  { %v222_v27 = vadd.f32 %v237_v22, %v221_v26 }
 0x1a8   :  { %v285_v28 = vpop.f32.mrf.mxu1 }
 0x1a9   :  { %226 = vst [vmem:[%s388_s5 + $0x8] sm:$0xff] %v222_v27 }
 0x1aa   :  { %231 = vsyncpa [#allocation3], 1 }

// kernel: _lambda_.1
= control target key start
LH: loop header
LB: loop body
LE: loop exit
PB: predicated region body
PF: predicated region fallthrough
CT: control target
= control target key end

     0   :  { %10 = vsyncpa [#allocation3], 0  ;;  %s324_s18 = smov [#allocation2]   ;;  %s383_s0 = inlined_call_operand.vmem [shape: bf16[16,32], index: 0, kind: input, shape index: {}]   ;;  %s384_s1 = inlined_call_operand.vmem [shape: bf16[32,128], index: 1, kind: input, shape index: {}]   ;;  %s385_s2 = inlined_call_operand.vmem [shape: f32[1,128], index: 2, kind: input, shape index: {}]   ;;  %s386_s3 = inlined_call_operand.hbm [shape: bf16[128,128], index: 3, kind: input, shape index: {}]   ;;  %s387_s4 = inlined_call_operand.vmem [shape: f32[1,128], index: 4, kind: input, shape index: {}]   ;;  %s388_s5 = inlined_call_operand.vmem [shape: f32[16,128], index: 5, kind: output, shape index: {}]  }
   0x1   :  { %s22_s19 = sshll.u32 %s324_s18, 4  ;;  %s23_s19 = int_to_ptr.vmem [resolvable:$true] %s22_s19 }
   0x2   :  { %s310_s20 = scalar_lea.vmem %s23_s19, 1024  ;;  %p315_p1 = scmp.lt.s32.totalorder %s23_s19, %s23_s19 }
   0x3   :  { %p311_p0 = scmp.ne.s32.totalorder %s23_s19, %s310_s20  ;;  %p316_p2 = scmp.lt.s32.totalorder %s310_s20, %s310_s20 }
   0x5   :  { %p317_p3 = por %p316_p2, %p315_p1 }
   0x7   :  { %p318_p4 = pnand %p317_p3, %p311_p0 }
   0x9   :  { %321 = shalt.err (!%p318_p4)
}
   0xa   :  { %s325_s21 = smov 64   ;;  %s326_s22 = smov 4  }
   0xb   :  { %28 = dma.hbm_to_vmem [thread:$0]  %s386_s3, 1024, %s23_s19, [#allocation3], %s325_s21, %s325_s21, %s326_s22  }
   0xc   :  { %322 = dma.done.wait [#allocation3], 1024  }
   0xd   :  { %323 = vsyncadd [#allocation3], 4294966272  ;;  %v327_v0 = vmov 0.0   ;;  %vm328_vm0 = vmmov 0   ;;  %v291_v1 = vld [vmem:[%s384_s1 + $0x8] sm:$0xff]   ;;  %v292_v2 = vld [vmem:[%s384_s1] sm:$0xff]  }
   0xe   :  { %258 = vmatprep.subr.bf16.mxu0 %v327_v0  ;;  %262 = vmatprep.mubr.msk.bf16.mxu0 %vm328_vm0, %v327_v0  ;;  %v294_v3 = vld [vmem:[#allocation2 + $0x38] sm:$0xff]   ;;  %v293_v4 = vld [vmem:[%s383_s0] sm:$0xff]   ;;  %v295_v5 = vld [vmem:[#allocation2 + $0x30] sm:$0xff]   ;;  %vm66_vm1 = vcmask 261120  }
   0xf   :  { %266 = vmatprep.subr.bf16.mxu1 %v327_v0  ;;  %282 = vmatprep.mubr.msk.bf16.mxu1 %vm328_vm0, %v327_v0  ;;  %v296_v6 = vld [vmem:[#allocation2 + $0x28] sm:$0xff]   ;;  %v297_v7 = vld [vmem:[#allocation2 + $0x20] sm:$0xff]   ;;  %v298_v8 = vld [vmem:[#allocation2 + $0x18] sm:$0xff]  }
  0x10   :  { %259 = vmatpush3.bf16.msra.mxu0 %v291_v1  ;;  %267 = vmatpush3.bf16.msra.mxu1 %v294_v3  ;;  %v299_v9 = vld [vmem:[#allocation2 + $0x10] sm:$0xff]   ;;  %v300_v10 = vld [vmem:[#allocation2 + $0x8] sm:$0xff]   ;;  %v301_v11 = vld [vmem:[#allocation2] sm:$0xff]  }
  0x11   :  { %260 = vmatprep.subr.bf16.mxu0 %v327_v0  ;;  %268 = vmatprep.subr.bf16.mxu1 %v327_v0  ;;  %v232_v12 = vld [vmem:[%s385_s2] ss:$0 sm:$0xff] }
  0x12   :  { %v237_v22 = vld [vmem:[%s387_s4] ss:$0 sm:$0xff] }
  0x14   :  { %261 = vmatpush3.bf16.msra.mxu0 %v292_v2  ;;  %269 = vmatpush3.bf16.msra.mxu1 %v295_v5 }
  0x15   :  { %270 = vmatprep.subr.bf16.mxu1 %v327_v0 }
  0x17   :  { %263 = vmatmul.mubr.msk.bf16.vlgmr.msra.gmra.mxu0 %vm66_vm1, %v293_v4 }
  0x18   :  { %271 = vmatpush3.bf16.msra.mxu1 %v296_v6 }
  0x19   :  { %272 = vmatprep.subr.bf16.mxu1 %v327_v0 }
  0x1c   :  { %273 = vmatpush3.bf16.msra.mxu1 %v297_v7 }
  0x1d   :  { %274 = vmatprep.subr.bf16.mxu1 %v327_v0 }
  0x20   :  { %275 = vmatpush3.bf16.msra.mxu1 %v298_v8 }
  0x21   :  { %276 = vmatprep.subr.bf16.mxu1 %v327_v0 }
  0x24   :  { %277 = vmatpush3.bf16.msra.mxu1 %v299_v9 }
  0x25   :  { %278 = vmatprep.subr.bf16.mxu1 %v327_v0 }
  0x28   :  { %279 = vmatpush3.bf16.msra.mxu1 %v300_v10 }
  0x29   :  { %280 = vmatprep.subr.bf16.mxu1 %v327_v0 }
  0x2c   :  { %281 = vmatpush3.bf16.msra.mxu1 %v301_v11 }
  0xd7   :  { %v104_v13 = vpop.f32.mrf.mxu0 }
  0xd8   :  { %v105_v15 = vadd.f32 %v232_v12, %v104_v13 }
  0xd9   :  { %v264_v14 = vpop.f32.mrf.mxu0 }
  0xda   :  { %v111_v19 = vmax.f32 %v105_v15, 0.0 }
  0xdb   :  { %v107_v16 = vpop.f32.mrf.mxu0 }
  0xdc   :  { %v108_v17 = vadd.f32 %v232_v12, %v107_v16 }
  0xdd   :  { %v265_v18 = vpop.f32.mrf.mxu0 }
  0xde   :  { %v112_v20 = vmax.f32 %v108_v17, 0.0 }
  0xe0   :  { %v113_v21 = vpack.c.bf16 %v112_v20, %v111_v19 }
  0xe2   :  { %283 = vmatmul.mubr.bf16.vlgmr.msra.gmra.mxu1 %v113_v21 }
 0x1a2   :  { %v218_v23 = vpop.f32.mrf.mxu1 }
 0x1a3   :  { %v219_v24 = vadd.f32 %v237_v22, %v218_v23 }
 0x1a4   :  { %v284_v25 = vpop.f32.mrf.mxu1 }
 0x1a5   :  { %225 = vst [vmem:[%s388_s5] sm:$0xff] %v219_v24 }
 0x1a6   :  { %v221_v26 = vpop.f32.mrf.mxu1 }
 0x1a7   :  { %v222_v27 = vadd.f32 %v237_v22, %v221_v26 }
 0x1a8   :  { %v285_v28 = vpop.f32.mrf.mxu1 }
 0x1a9   :  { %226 = vst [vmem:[%s388_s5 + $0x8] sm:$0xff] %v222_v27 }
 0x1aa   :  { %231 = vsyncpa [#allocation3], 1 }

</bundles_post_ra>
